<compile_context>
chip_gen: v6e
topology: v6e:2x2x1
jax: 0.10.0
libtpu: 0.0.40
codegen_flags: <defaults>
</compile_context>

<pallas_src>
import math

import jax
import jax.numpy as jnp
from jax.experimental import pallas as pl
from jax.experimental.pallas import tpu as pltpu

IN_FEATURES = 5
OUT_FEATURES = 5

# Per-generation batch-tile widths (lanes).  A (5, tb) f32 tile is 20*tb bytes;
# tb=131072 -> 2.5 MiB per tile (~10 MiB with in+out double-buffered), well
# under the scoped-VMEM default on every generation.
_TB_V5E = 32_768      # ~820 GB/s HBM: 0.35 us ~ 290 KB, smaller tiles suffice
_TB_V6E = 65_536
_TB_V7X = 131_072     # 3.2 TB/s HBM needs the largest tiles
_TB_DEFAULT = 65_536

# Below this many rows the Pallas launch + layout passes dwarf the useful
# 40 B/row of traffic; fall back to one fused XLA op.
_MIN_PALLAS_ROWS = 4096

# Split a single-tile grid in two once the batch is at least this big so the
# "parallel" grid axis can shard across both TensorCores (v7x megacore).
_MIN_SPLIT_ROWS = 16_384


def _round_up(n: int, m: int) -> int:
    return ((n + m - 1) // m) * m


def _tile_cols_for_device() -> int:
    """Pick the batch-tile width (lanes) for the current TPU generation."""
    try:
        kind = jax.devices()[0].device_kind.lower()
    except Exception:  # pragma: no cover - defensive, e.g. no device yet
        return _TB_DEFAULT
    if "v5" in kind:
        return _TB_V5E
    if "v6" in kind:
        return _TB_V6E
    if "v7" in kind:
        return _TB_V7X
    return _TB_DEFAULT


def _linear_kernel(w_ref, b_ref, x_ref, o_ref):
    # w_ref: (5, 5)   PyTorch layout (out_features, in_features)
    # b_ref: (5, 1)   bias as a column, broadcast over the lane (batch) axis
    # x_ref: (5, tb)  transposed input tile (in_features, batch)
    # o_ref: (5, tb)  transposed output tile (out_features, batch)
    acc = jnp.dot(w_ref[...], x_ref[...], preferred_element_type=jnp.float32)
    o_ref[...] = (acc + b_ref[...]).astype(o_ref.dtype)


def dummy_net_forward(x, y, weight, bias, *, min_pallas_rows=_MIN_PALLAS_ROWS,
                      tile_cols=None):
    """Pallas implementation of DummyNet.forward(x, y).

    x:      (..., 5) float32
    y:      unused (kept for signature parity with the PyTorch module)
    weight: (5, 5)  (out_features, in_features), PyTorch nn.Linear layout
    bias:   (5,)
    """
    del y  # unused, exactly as in the PyTorch module
    orig_shape = x.shape
    assert orig_shape[-1] == IN_FEATURES
    out_shape_full = (*orig_shape[:-1], OUT_FEATURES)

    x2d = x.reshape(-1, IN_FEATURES)
    batch = x2d.shape[0]

    if batch == 0:  # degenerate case: nothing to do
        return jnp.zeros(out_shape_full, dtype=x.dtype)

    if batch < min_pallas_rows:
        # Small-batch fast path: one fused XLA matmul beats the Pallas launch
        # plus the transpose passes at this size.
        return (x2d @ weight.T + bias).astype(x.dtype).reshape(out_shape_full)

    # Lane-dense transposed layout: batch on the 128-wide lane axis, the
    # 5-wide feature axis on sublanes.
    # TODO(synk): keep activations in (features, batch) layout across the
    # surrounding model to drop this transpose and the one on the output;
    # each is a full HBM pass on a purely bandwidth-bound op.
    x_t = x2d.T  # (5, B)

    padded128 = _round_up(batch, 128)
    tb_target = tile_cols if tile_cols is not None else _tile_cols_for_device()
    assert tb_target % 128 == 0, "tile_cols must be a multiple of 128"
    tb = min(tb_target, padded128)
    if padded128 <= tb and padded128 >= _MIN_SPLIT_ROWS:
        # A single-tile grid would leave one TensorCore idle on v7x; split so
        # the "parallel" axis has >= 2 programs to shard.
        tb = _round_up(pl.cdiv(padded128, 2), 128)
    num_tiles = pl.cdiv(batch, tb)

    bias_col = bias.reshape(OUT_FEATURES, 1)

    itemsize = jnp.dtype(x.dtype).itemsize
    tile_bytes = OUT_FEATURES * tb * itemsize  # in-tile and out-tile are equal
    # in + out, double-buffered, plus weight/bias/slack headroom.
    vmem_limit = min(96 * 2 ** 20, max(4 * tile_bytes + (2 << 20), 8 * 2 ** 20))

    cost = pl.CostEstimate(
        flops=2 * batch * IN_FEATURES * OUT_FEATURES,
        transcendentals=0,
        bytes_accessed=(batch * IN_FEATURES * itemsize     # x in
                        + batch * OUT_FEATURES * itemsize  # out
                        + IN_FEATURES * OUT_FEATURES * itemsize
                        + OUT_FEATURES * itemsize),
    )

    out_t = pl.pallas_call(
        _linear_kernel,
        out_shape=jax.ShapeDtypeStruct((OUT_FEATURES, batch), x.dtype),
        grid_spec=pltpu.PrefetchScalarGridSpec(
            num_scalar_prefetch=0,
            grid=(num_tiles,),
            in_specs=[
                pl.BlockSpec((OUT_FEATURES, IN_FEATURES), lambda i: (0, 0)),
                pl.BlockSpec((OUT_FEATURES, 1), lambda i: (0, 0)),
                pl.BlockSpec((IN_FEATURES, tb), lambda i: (0, i)),
            ],
            out_specs=pl.BlockSpec((OUT_FEATURES, tb), lambda i: (0, i)),
        ),
        compiler_params=pltpu.CompilerParams(
            dimension_semantics=("parallel",),
            vmem_limit_bytes=int(vmem_limit),
        ),
        cost_estimate=cost,
    )(weight, bias_col, x_t)

    out2d = out_t.T  # back to (B, 5); no slicing needed (no padding was added)
    return out2d.reshape(out_shape_full)


def init_params(key):
    """Deterministic init mimicking nn.Linear default (uniform +-1/sqrt(fan_in))."""
    kw, kb = jax.random.split(key)
    bound = 1.0 / math.sqrt(IN_FEATURES)
    weight = jax.random.uniform(
        kw, (OUT_FEATURES, IN_FEATURES), jnp.float32, -bound, bound
    )
    bias = jax.random.uniform(kb, (OUT_FEATURES,), jnp.float32, -bound, bound)
    return weight, bias


if __name__ == "__main__":
    key = jax.random.PRNGKey(0)
    kx, ky, kp = jax.random.split(key, 3)

    # Small shapes consistent with forward(x, y): x has trailing feature dim 5.
    x = jax.random.normal(kx, (2, 4, IN_FEATURES), dtype=jnp.float32)
    y = jax.random.randint(ky, (2,), 0, 10)  # unused by the forward pass

    weight, bias = init_params(kp)

    # Force the Pallas path even at this small batch so the kernel is
    # exercised (the default wrapper would route small batches to plain XLA).
    out = dummy_net_forward(x, y, weight, bias, min_pallas_rows=1)
    out = jax.block_until_ready(out)

    # Reference check in plain JAX (same math as torch Linear: x @ W^T + b).
    ref = (x.reshape(-1, IN_FEATURES) @ weight.T + bias).reshape(2, 4, OUT_FEATURES)
    assert out.shape == (2, 4, OUT_FEATURES)
    assert jnp.allclose(out, ref, atol=1e-5, rtol=1e-5)

    # Default routing for small batches (XLA fast path) must also match.
    out_xla = jax.block_until_ready(dummy_net_forward(x, y, weight, bias))
    assert jnp.allclose(out_xla, ref, atol=1e-5, rtol=1e-5)

    # Multi-tile Pallas grid with a partial (masked) last block: 2100 rows,
    # 512-column tiles -> 5 grid steps, last block 52 columns.
    kx2 = jax.random.fold_in(kx, 1)
    x_big = jax.random.normal(kx2, (3, 700, IN_FEATURES), dtype=jnp.float32)
    out_big = jax.block_until_ready(
        dummy_net_forward(x_big, y, weight, bias, min_pallas_rows=1, tile_cols=512)
    )
    ref_big = (x_big.reshape(-1, IN_FEATURES) @ weight.T + bias).reshape(
        3, 700, OUT_FEATURES
    )
    assert out_big.shape == (3, 700, OUT_FEATURES)
    assert jnp.allclose(out_big, ref_big, atol=1e-5, rtol=1e-5)

    print("KERNEL_OK")
</pallas_src>

<mosaic_0001>
module attributes {stable_mosaic.version = 11 : i64} {
  func.func @_linear_kernel(%arg0: i32, %arg1: memref<5x5xf32, #tpu.memory_space<vmem>>, %arg2: memref<5x1xf32, #tpu.memory_space<vmem>>, %arg3: memref<5x128xf32, #tpu.memory_space<vmem>>, %arg4: memref<5x128xf32, #tpu.memory_space<vmem>>) attributes {dimension_semantics = [#tpu.dimension_semantics<parallel>], iteration_bounds = array<i64: 1>, scalar_prefetch = 0 : i64, scratch_operands = 0 : i64, tpu.core_type = #tpu.core_type<tc>, window_params = [{pipeline_mode = #tpu.pipeline_mode<synchronous>, transform_indices = @transform_0, window_bounds = array<i64: 5, 5>}, {pipeline_mode = #tpu.pipeline_mode<synchronous>, transform_indices = @transform_1, window_bounds = array<i64: 5, 1>}, {transform_indices = @transform_2, window_bounds = array<i64: 5, 128>}, {transform_indices = @transform_3, window_bounds = array<i64: 5, 128>}]} {
    %c0 = arith.constant 0 : index
    %c0_0 = arith.constant 0 : index
    %0 = vector.load %arg1[%c0, %c0_0] : memref<5x5xf32, #tpu.memory_space<vmem>>, vector<5x5xf32>
    %c0_1 = arith.constant 0 : index
    %c0_2 = arith.constant 0 : index
    %1 = vector.load %arg3[%c0_1, %c0_2] : memref<5x128xf32, #tpu.memory_space<vmem>>, vector<5x128xf32>
    %cst = arith.constant dense<0.000000e+00> : vector<5x128xf32>
    %2 = tpu.matmul %0, %1, %cst {dimension_numbers = #tpu.dot_dimension_numbers<[1], [0], [0], [1], [0, 0, 1, 1], [], []>} : vector<5x5xf32>, vector<5x128xf32>, vector<5x128xf32> -> vector<5x128xf32>
    %c0_3 = arith.constant 0 : index
    %c0_4 = arith.constant 0 : index
    %3 = vector.load %arg2[%c0_3, %c0_4] : memref<5x1xf32, #tpu.memory_space<vmem>>, vector<5x1xf32>
    %4 = vector.broadcast %3 : vector<5x1xf32> to vector<5x128xf32>
    %5 = arith.addf %2, %4 : vector<5x128xf32>
    %c0_5 = arith.constant 0 : index
    %c0_6 = arith.constant 0 : index
    %6 = vector.load %arg4[%c0_5, %c0_6] : memref<5x128xf32, #tpu.memory_space<vmem>>, vector<5x128xf32>
    tpu.vector_store %arg4[%c0_5, %c0_6], %5 {strides = array<i32>} : memref<5x128xf32, #tpu.memory_space<vmem>>, vector<5x128xf32>,
    return
  }
  func.func @transform_0(%arg0: i32) -> (i32, i32) {
    %c0_i32 = arith.constant 0 : i32
    %c0_i32_0 = arith.constant 0 : i32
    %c0_i32_1 = arith.constant 0 : i32
    return %c0_i32, %c0_i32_0 : i32, i32
  }
  func.func @transform_1(%arg0: i32) -> (i32, i32) {
    %c0_i32 = arith.constant 0 : i32
    %c0_i32_0 = arith.constant 0 : i32
    %c0_i32_1 = arith.constant 0 : i32
    return %c0_i32, %c0_i32_0 : i32, i32
  }
  func.func @transform_2(%arg0: i32) -> (i32, i32) {
    %c0_i32 = arith.constant 0 : i32
    %c0_i32_0 = arith.constant 0 : i32
    return %c0_i32, %arg0 : i32, i32
  }
  func.func @transform_3(%arg0: i32) -> (i32, i32) {
    %c0_i32 = arith.constant 0 : i32
    %c0_i32_0 = arith.constant 0 : i32
    return %c0_i32, %arg0 : i32, i32
  }
}

</mosaic_0001>

<bundles_post_ra>
// kernel: tpu_custom_call.1
= control target key start
LH: loop header
LB: loop body
LE: loop exit
PB: predicated region body
PF: predicated region fallthrough
CT: control target
= control target key end

     0   :  { %8 = vsyncpa [#allocation3], 0  ;;  %s225_s0 = inlined_call_operand.vmem [shape: f32[5,5], index: 0, kind: input, shape index: {}]   ;;  %s226_s1 = inlined_call_operand.vmem [shape: f32[5,1], index: 1, kind: input, shape index: {}]   ;;  %s227_s2 = inlined_call_operand.hbm [shape: f32[5,8], index: 2, kind: input, shape index: {}]   ;;  %s228_s3 = inlined_call_operand.hbm [shape: f32[5,8], index: 3, kind: output, shape index: {}]  }
   0x1   :  { %9 = vsyncpa [#allocation4], 0  ;;  %s188_s12 = smov [#allocation2]  }
   0x2   :  { %s20_s13 = sshll.u32 %s188_s12, 4  ;;  %s21_s13 = int_to_ptr.vmem [resolvable:$true] %s20_s13 }
   0x3   :  { %s152_s14 = scalar_lea.vmem %s21_s13, 128  ;;  %p157_p1 = scmp.lt.s32.totalorder %s21_s13, %s21_s13 }
   0x4   :  { %p153_p0 = scmp.ne.s32.totalorder %s21_s13, %s152_s14  ;;  %p158_p2 = scmp.lt.s32.totalorder %s152_s14, %s152_s14 }
   0x6   :  { %p159_p3 = por %p158_p2, %p157_p1 }
   0x8   :  { %p160_p4 = pnand %p159_p3, %p153_p0 }
   0xa   :  { %163 = shalt.err (!%p160_p4)
}
   0xb   :  { %23 = dma.hbm_to_vmem [thread:$0]  %s227_s2, 128, %s21_s13, [#allocation3]  }
   0xc   :  { %184 = dma.done.wait [#allocation3], 128  }
   0xd   :  { %185 = vsyncadd [#allocation3], 4294967168  ;;  %v189_v0 = vmov 0.0   ;;  %vm190_vm0 = vmmov 0   ;;  %v191_v1 = vmov 0   ;;  %vm39_vm1 = vcmask 1044480  }
   0xe   :  { %133 = vmatprep.subr.mxu0 %v189_v0  ;;  %135 = vmatprep.mubr.msk.f32.mxu0 %vm190_vm0, %v189_v0  ;;  %vm35_vm2 = vcmask 39936   ;;  %v28_v2 = vld [vmem:[#allocation2] sm:$0x1f]  ;;  %s192_s2 = smov [#allocation5]  }
   0xf   :  { %143 = vset.pattern.permute.xlu0 %v191_v1  ;;  %v27_v3 = vld [vmem:[%s225_s0] sm:$0x1f]  ;;  %134 = vmatpush3.msk.msra.mxu0 %vm39_vm1, %v28_v2  ;;  %s120_s21 = sshll.u32 %s192_s2, 4  ;;  %s121_s21 = int_to_ptr.vmem [resolvable:$true] %s120_s21 }
  0x10   :  { %v29_v4 = vld [vmem:[%s226_s1] sm:$0x1f]  ;;  %136 = vmatmul.mubr.msk.f32.vlgmr.msra.gmra.mxu0 %vm35_vm2, %v27_v3  ;;  %s164_s22 = scalar_lea.vmem %s121_s21, 128  ;;  %p169_p6 = scmp.lt.s32.totalorder %s121_s21, %s121_s21 }
  0x11   :  { %32 = vperm.xlu0 %143, %v29_v4   ;;  %p165_p5 = scmp.ne.s32.totalorder %s121_s21, %s164_s22  ;;  %p170_p7 = scmp.lt.s32.totalorder %s164_s22, %s164_s22 }
  0x13   :  { %p171_p8 = por %p170_p7, %p169_p6 }
  0x15   :  { %p172_p9 = pnand %p171_p8, %p165_p5 }
  0x8c   :  { %v33_v5 = vpop.permute.xlu0 %32 }
  0xd0   :  { %v109_v6 = vpop.f32.mrf.mxu0 }
  0xd1   :  { %v110_v7 = vadd.f32 %v109_v6, %v33_v5 }
  0xd2   :  { %v137_v8 = vpop.f32.mrf.mxu0 }
  0xd3   :  { %113 = vst [vmem:[#allocation5] sm:$0x1f] %v110_v7 }
  0xd4   :  { %175 = shalt.err (!%p172_p9)
}
  0xd5   :  { %123 = dma.vmem_to_hbm [thread:$0]  %s121_s21, 128, %s228_s3, [#allocation4]  }
  0xd6   :  { %186 = dma.done.wait [#allocation4], 128  }
  0xd7   :  { %187 = vsyncadd [#allocation4], 4294967168 }
  0xd8   :  { %127 = vsyncpa [#allocation3], 1 }
  0xd9   :  { %128 = vsyncpa [#allocation4], 1 }

</bundles_post_ra>
